<compile_context>
chip_gen: v7x
topology: tpu7x:2x2x1
jax: 0.10.0
libtpu: 0.0.40
codegen_flags: <defaults>
</compile_context>

<pallas_src>
import functools
import math

import jax
import jax.numpy as jnp
from jax.experimental import pallas as pl
from jax.experimental.pallas import tpu as pltpu

OUTPUT_COLUMNS = ['CN', 'CM', 'CA', 'CY', 'CL', 'CD', 'CNA', 'CMA', 'CYB', 'CLNB', 'CLLB']
HIDDEN = 128
LANE = 128


def _round_up(n, m):
    return ((n + m - 1) // m) * m


def _mlp_kernel(x_ref, w1_ref, b1_ref, w2_ref, b2_ref, w3_ref, b3_ref, o_ref):
    # Layer 1: Linear(I, 128) + ReLU. x streamed as f32, cast to bf16 on the VPU so the
    # MXU runs full-rate bf16 with f32 accumulation.
    x = x_ref[...].astype(jnp.bfloat16)
    h1 = jnp.dot(x, w1_ref[...], preferred_element_type=jnp.float32) + b1_ref[...]
    h1 = jnp.maximum(h1, 0.0).astype(jnp.bfloat16)
    # Layer 2: Linear(128, 128) + ReLU.
    h2 = jnp.dot(h1, w2_ref[...], preferred_element_type=jnp.float32) + b2_ref[...]
    h2 = jnp.maximum(h2, 0.0).astype(jnp.bfloat16)
    # Layer 3: Linear(128, O). Matmul against the lane-padded (zero-column) w3 for a
    # clean 128-wide MXU shape; store only the first O columns. The extra padded
    # columns never reach HBM, so writeback is 44 B/row instead of 512 B/row.
    y = jnp.dot(h2, w3_ref[...], preferred_element_type=jnp.float32) + b3_ref[...]
    o_ref[...] = y[:, :o_ref.shape[1]].astype(o_ref.dtype)


def _jnp_forward(x, p):
    """Plain fused XLA fallback (exact f32 PyTorch semantics) for tiny batches."""
    h1 = jnp.maximum(x @ p["w1"] + p["b1"], 0.0)
    h2 = jnp.maximum(h1 @ p["w2"] + p["b2"], 0.0)
    return h2 @ p["w3"] + p["b3"]


@functools.partial(jax.jit, static_argnames=("tb", "force_pallas"))
def general_nn_forward(x, params, *, tb=4096, force_pallas=False):
    """Full MLP forward in one Pallas kernel.

    x: (B, input_size) float32
    params: dict with w1 (I,128), b1 (1,128), w2 (128,128), b2 (1,128),
            w3 (128,O), b3 (1,O) in float32.
    Returns (B, O) float32.
    """
    B, I = x.shape
    O = params["w3"].shape[1]

    # Tiny batches: pallas_call fixed cost (pipeline prologue, DMAs, launch) dominates;
    # the fused XLA dot chain is as fast or faster.
    if not force_pallas and B < 512:
        return _jnp_forward(x, params)

    # bf16 weights: halves weight DMA bytes; accumulation stays f32 in-kernel.
    w1 = params["w1"].astype(jnp.bfloat16)
    w2 = params["w2"].astype(jnp.bfloat16)
    w3 = params["w3"].astype(jnp.bfloat16)
    b1 = params["b1"].astype(jnp.float32)
    b2 = params["b2"].astype(jnp.float32)
    b3 = params["b3"].astype(jnp.float32)

    # Lane-pad only the *weights/bias* of the final layer (zero columns) for a clean MXU
    # shape; the HBM output itself stays unpadded.
    w3p = jnp.zeros((HIDDEN, LANE), jnp.bfloat16).at[:, :O].set(w3)
    b3p = jnp.zeros((1, LANE), jnp.float32).at[:, :O].set(b3)

    # Batch tiling: big tiles amortize the ~0.35 us per-grid-step overhead; cap at
    # tb (default 4096) so pipeline buffers + intermediates fit v5e's scoped VMEM.
    # For large batches force >= 2 grid steps so v7x's second TensorCore gets work.
    rows = _round_up(B, 16)                       # 16-row tiles: native bf16 sublane tile
    steps = max(1, math.ceil(rows / tb))
    if rows >= 2048:
        steps = max(steps, 2)
    TB = _round_up(math.ceil(rows / steps), 16)
    B_pad = steps * TB

    # x streams as f32 straight into the kernel (no wrapper-side cast/pad pass); only
    # materialize a padded copy when the tile doesn't divide the batch. Padded rows
    # compute ReLU(b1)-driven garbage that is sliced away below.
    x_in = x if B_pad == B else jnp.zeros((B_pad, I), x.dtype).at[:B].set(x)

    resident = lambda shape: pl.BlockSpec(shape, lambda i: (0, 0))

    flops = 2 * B_pad * (I * HIDDEN + HIDDEN * HIDDEN + HIDDEN * LANE)
    bytes_accessed = (x_in.size * 4
                      + (w1.size + w2.size + w3p.size) * 2
                      + (b1.size + b2.size + b3p.size) * 4
                      + B_pad * O * 4)

    out = pl.pallas_call(
        _mlp_kernel,
        out_shape=jax.ShapeDtypeStruct((B_pad, O), jnp.float32),
        grid=(steps,),
        in_specs=[
            pl.BlockSpec((TB, I), lambda i: (i, 0)),            # activations stream over grid
            resident((I, HIDDEN)), resident((1, HIDDEN)),       # layer 1 (VMEM-resident)
            resident((HIDDEN, HIDDEN)), resident((1, HIDDEN)),  # layer 2 (VMEM-resident)
            resident((HIDDEN, LANE)), resident((1, LANE)),      # layer 3 (resident, lane-padded)
        ],
        # Unpadded output block: last dim == full array dim (legal); HBM tile is the full
        # row width so the writeback DMA is dense.
        out_specs=pl.BlockSpec((TB, O), lambda i: (i, 0)),
        compiler_params=pltpu.CompilerParams(
            dimension_semantics=("parallel",),                  # v7x: shard batch grid over both TCs
            vmem_limit_bytes=32 * 1024 * 1024),                 # headroom for 4096-row tiles on v5e
        cost_estimate=pl.CostEstimate(flops=flops, transcendentals=0,
                                      bytes_accessed=bytes_accessed),
    )(x_in, w1, b1, w2, b2, w3p, b3p)

    return out if B_pad == B else out[:B]


def init_params(key, input_size, output_size):
    """Deterministic synthetic init matching the nn.Sequential layer shapes (f32 master copy)."""
    k1, k2, k3, k4, k5, k6 = jax.random.split(key, 6)
    scale1 = 1.0 / jnp.sqrt(input_size)
    scale2 = 1.0 / jnp.sqrt(HIDDEN)
    return {
        "w1": jax.random.uniform(k1, (input_size, HIDDEN), jnp.float32, -scale1, scale1),
        "b1": jax.random.uniform(k2, (1, HIDDEN), jnp.float32, -scale1, scale1),
        "w2": jax.random.uniform(k3, (HIDDEN, HIDDEN), jnp.float32, -scale2, scale2),
        "b2": jax.random.uniform(k4, (1, HIDDEN), jnp.float32, -scale2, scale2),
        "w3": jax.random.uniform(k5, (HIDDEN, output_size), jnp.float32, -scale2, scale2),
        "b3": jax.random.uniform(k6, (1, output_size), jnp.float32, -scale2, scale2),
    }


def reference_forward(x, p):
    """Pure-JAX reference mirroring the kernel's bf16-in / f32-accumulate numerics."""
    bf = lambda a: a.astype(jnp.bfloat16).astype(jnp.float32)
    hp = jax.lax.Precision.HIGHEST
    h1 = jnp.maximum(jnp.dot(bf(x), bf(p["w1"]), precision=hp) + p["b1"], 0.0)
    h2 = jnp.maximum(jnp.dot(bf(h1), bf(p["w2"]), precision=hp) + p["b2"], 0.0)
    return jnp.dot(bf(h2), bf(p["w3"]), precision=hp) + p["b3"]


# TODO(synk): training loop / DataLoader / loss from ANN_evaluator.py are out of scope;
# only the GeneralNN forward pass is implemented as a Pallas kernel.

if __name__ == "__main__":
    key = jax.random.PRNGKey(0)
    k_x, k_p, k_x2 = jax.random.split(key, 3)

    input_size = 16
    output_size = len(OUTPUT_COLUMNS)  # 11
    params = init_params(k_p, input_size, output_size)

    # Small-shape test: force the Pallas path (B=8 -> single 16-row padded tile).
    x_small = jax.random.normal(k_x, (8, input_size), jnp.float32)
    out_small = jax.block_until_ready(general_nn_forward(x_small, params, force_pallas=True))
    ref_small = reference_forward(x_small, params)
    assert out_small.shape == (8, output_size), out_small.shape
    assert jnp.allclose(out_small, ref_small, atol=1e-4, rtol=1e-4), \
        float(jnp.max(jnp.abs(out_small - ref_small)))

    # Streaming test: multi-step grid + batch-padding path (B=2500 -> TB=848, grid=3).
    x_big = jax.random.normal(k_x2, (2500, input_size), jnp.float32)
    out_big = jax.block_until_ready(general_nn_forward(x_big, params, tb=1024))
    ref_big = reference_forward(x_big, params)
    assert out_big.shape == (2500, output_size), out_big.shape
    assert jnp.allclose(out_big, ref_big, atol=1e-4, rtol=1e-4), \
        float(jnp.max(jnp.abs(out_big - ref_big)))

    print("KERNEL_OK")
</pallas_src>

<mosaic_0001>
module attributes {stable_mosaic.version = 11 : i64} {
  func.func @_mlp_kernel(%arg0: i32, %arg1: memref<16x16xf32, #tpu.memory_space<vmem>>, %arg2: memref<16x128xbf16, #tpu.memory_space<vmem>>, %arg3: memref<1x128xf32, #tpu.memory_space<vmem>>, %arg4: memref<128x128xbf16, #tpu.memory_space<vmem>>, %arg5: memref<1x128xf32, #tpu.memory_space<vmem>>, %arg6: memref<128x128xbf16, #tpu.memory_space<vmem>>, %arg7: memref<1x128xf32, #tpu.memory_space<vmem>>, %arg8: memref<16x11xf32, #tpu.memory_space<vmem>>) attributes {dimension_semantics = [#tpu.dimension_semantics<parallel>], iteration_bounds = array<i64: 1>, scalar_prefetch = 0 : i64, scratch_operands = 0 : i64, tpu.core_type = #tpu.core_type<tc>, window_params = [{transform_indices = @transform_0, window_bounds = array<i64: 16, 16>}, {pipeline_mode = #tpu.pipeline_mode<synchronous>, transform_indices = @transform_1, window_bounds = array<i64: 16, 128>}, {pipeline_mode = #tpu.pipeline_mode<synchronous>, transform_indices = @transform_2, window_bounds = array<i64: 1, 128>}, {pipeline_mode = #tpu.pipeline_mode<synchronous>, transform_indices = @transform_3, window_bounds = array<i64: 128, 128>}, {pipeline_mode = #tpu.pipeline_mode<synchronous>, transform_indices = @transform_4, window_bounds = array<i64: 1, 128>}, {pipeline_mode = #tpu.pipeline_mode<synchronous>, transform_indices = @transform_5, window_bounds = array<i64: 128, 128>}, {pipeline_mode = #tpu.pipeline_mode<synchronous>, transform_indices = @transform_6, window_bounds = array<i64: 1, 128>}, {transform_indices = @transform_7, window_bounds = array<i64: 16, 11>}]} {
    %c0 = arith.constant 0 : index
    %c0_0 = arith.constant 0 : index
    %0 = vector.load %arg1[%c0, %c0_0] : memref<16x16xf32, #tpu.memory_space<vmem>>, vector<16x16xf32>
    %1 = arith.truncf %0 : vector<16x16xf32> to vector<16x16xbf16>
    %c0_1 = arith.constant 0 : index
    %c0_2 = arith.constant 0 : index
    %2 = vector.load %arg2[%c0_1, %c0_2] : memref<16x128xbf16, #tpu.memory_space<vmem>>, vector<16x128xbf16>
    %cst = arith.constant dense<0.000000e+00> : vector<16x128xf32>
    %3 = tpu.matmul %1, %2, %cst {dimension_numbers = #tpu.dot_dimension_numbers<[1], [0], [0], [1], [0, 0, 1, 1], [], []>} : vector<16x16xbf16>, vector<16x128xbf16>, vector<16x128xf32> -> vector<16x128xf32>
    %c0_3 = arith.constant 0 : index
    %c0_4 = arith.constant 0 : index
    %4 = vector.load %arg3[%c0_3, %c0_4] : memref<1x128xf32, #tpu.memory_space<vmem>>, vector<1x128xf32>
    %5 = vector.broadcast %4 : vector<1x128xf32> to vector<16x128xf32>
    %6 = arith.addf %3, %5 : vector<16x128xf32>
    %cst_5 = arith.constant 0.000000e+00 : f32
    %7 = vector.broadcast %cst_5 : f32 to vector<16x128xf32>
    %8 = arith.maximumf %6, %7 : vector<16x128xf32>
    %9 = arith.truncf %8 : vector<16x128xf32> to vector<16x128xbf16>
    %c0_6 = arith.constant 0 : index
    %c0_7 = arith.constant 0 : index
    %10 = vector.load %arg4[%c0_6, %c0_7] : memref<128x128xbf16, #tpu.memory_space<vmem>>, vector<128x128xbf16>
    %cst_8 = arith.constant dense<0.000000e+00> : vector<16x128xf32>
    %11 = tpu.matmul %9, %10, %cst_8 {dimension_numbers = #tpu.dot_dimension_numbers<[1], [0], [0], [1], [0, 0, 1, 1], [], []>} : vector<16x128xbf16>, vector<128x128xbf16>, vector<16x128xf32> -> vector<16x128xf32>
    %c0_9 = arith.constant 0 : index
    %c0_10 = arith.constant 0 : index
    %12 = vector.load %arg5[%c0_9, %c0_10] : memref<1x128xf32, #tpu.memory_space<vmem>>, vector<1x128xf32>
    %13 = vector.broadcast %12 : vector<1x128xf32> to vector<16x128xf32>
    %14 = arith.addf %11, %13 : vector<16x128xf32>
    %cst_11 = arith.constant 0.000000e+00 : f32
    %15 = vector.broadcast %cst_11 : f32 to vector<16x128xf32>
    %16 = arith.maximumf %14, %15 : vector<16x128xf32>
    %17 = arith.truncf %16 : vector<16x128xf32> to vector<16x128xbf16>
    %c0_12 = arith.constant 0 : index
    %c0_13 = arith.constant 0 : index
    %18 = vector.load %arg6[%c0_12, %c0_13] : memref<128x128xbf16, #tpu.memory_space<vmem>>, vector<128x128xbf16>
    %cst_14 = arith.constant dense<0.000000e+00> : vector<16x128xf32>
    %19 = tpu.matmul %17, %18, %cst_14 {dimension_numbers = #tpu.dot_dimension_numbers<[1], [0], [0], [1], [0, 0, 1, 1], [], []>} : vector<16x128xbf16>, vector<128x128xbf16>, vector<16x128xf32> -> vector<16x128xf32>
    %c0_15 = arith.constant 0 : index
    %c0_16 = arith.constant 0 : index
    %20 = vector.load %arg7[%c0_15, %c0_16] : memref<1x128xf32, #tpu.memory_space<vmem>>, vector<1x128xf32>
    %21 = vector.broadcast %20 : vector<1x128xf32> to vector<16x128xf32>
    %22 = arith.addf %19, %21 : vector<16x128xf32>
    %23 = vector.extract_strided_slice %22 {offsets = [0, 0], sizes = [16, 11], strides = [1, 1]} : vector<16x128xf32> to vector<16x11xf32>
    %c0_17 = arith.constant 0 : index
    %c0_18 = arith.constant 0 : index
    %24 = vector.load %arg8[%c0_17, %c0_18] : memref<16x11xf32, #tpu.memory_space<vmem>>, vector<16x11xf32>
    tpu.vector_store %arg8[%c0_17, %c0_18], %23 {strides = array<i32>} : memref<16x11xf32, #tpu.memory_space<vmem>>, vector<16x11xf32>,
    return
  }
  func.func @transform_0(%arg0: i32) -> (i32, i32) {
    %c0_i32 = arith.constant 0 : i32
    %c0_i32_0 = arith.constant 0 : i32
    return %arg0, %c0_i32 : i32, i32
  }
  func.func @transform_1(%arg0: i32) -> (i32, i32) {
    %c0_i32 = arith.constant 0 : i32
    %c0_i32_0 = arith.constant 0 : i32
    %c0_i32_1 = arith.constant 0 : i32
    return %c0_i32, %c0_i32_0 : i32, i32
  }
  func.func @transform_2(%arg0: i32) -> (i32, i32) {
    %c0_i32 = arith.constant 0 : i32
    %c0_i32_0 = arith.constant 0 : i32
    %c0_i32_1 = arith.constant 0 : i32
    return %c0_i32, %c0_i32_0 : i32, i32
  }
  func.func @transform_3(%arg0: i32) -> (i32, i32) {
    %c0_i32 = arith.constant 0 : i32
    %c0_i32_0 = arith.constant 0 : i32
    %c0_i32_1 = arith.constant 0 : i32
    return %c0_i32, %c0_i32_0 : i32, i32
  }
  func.func @transform_4(%arg0: i32) -> (i32, i32) {
    %c0_i32 = arith.constant 0 : i32
    %c0_i32_0 = arith.constant 0 : i32
    %c0_i32_1 = arith.constant 0 : i32
    return %c0_i32, %c0_i32_0 : i32, i32
  }
  func.func @transform_5(%arg0: i32) -> (i32, i32) {
    %c0_i32 = arith.constant 0 : i32
    %c0_i32_0 = arith.constant 0 : i32
    %c0_i32_1 = arith.constant 0 : i32
    return %c0_i32, %c0_i32_0 : i32, i32
  }
  func.func @transform_6(%arg0: i32) -> (i32, i32) {
    %c0_i32 = arith.constant 0 : i32
    %c0_i32_0 = arith.constant 0 : i32
    %c0_i32_1 = arith.constant 0 : i32
    return %c0_i32, %c0_i32_0 : i32, i32
  }
  func.func @transform_7(%arg0: i32) -> (i32, i32) {
    %c0_i32 = arith.constant 0 : i32
    %c0_i32_0 = arith.constant 0 : i32
    return %arg0, %c0_i32 : i32, i32
  }
}

</mosaic_0001>

<bundles_post_ra>
// kernel: general_nn_forward.1
= control target key start
LH: loop header
LB: loop body
LE: loop exit
PB: predicated region body
PF: predicated region fallthrough
CT: control target
= control target key end

     0   :  { %v433_v0 = vmov 0.0   ;;  %vm434_vm0 = vmmov 0   ;;  %vm45_vm1 = vcmask 130048   ;;  %vm320_vm2 = vcmask 89088   ;;  %s567_s1 = inlined_call_operand.vmem [shape: bf16[16,128], index: 1, kind: input, shape index: {}]   ;;  %s568_s0 = inlined_call_operand.vmem [shape: f32[16,16], index: 0, kind: input, shape index: {}]   ;;  %s569_s3 = inlined_call_operand.vmem [shape: bf16[128,128], index: 3, kind: input, shape index: {}]   ;;  %s570_s5 = inlined_call_operand.vmem [shape: bf16[128,128], index: 5, kind: input, shape index: {}]   ;;  %s571_s2 = inlined_call_operand.vmem [shape: f32[1,128], index: 2, kind: input, shape index: {}]   ;;  %s572_s4 = inlined_call_operand.vmem [shape: f32[1,128], index: 4, kind: input, shape index: {}]   ;;  %s573_s6 = inlined_call_operand.vmem [shape: f32[1,128], index: 6, kind: input, shape index: {}]   ;;  %s574_s7 = inlined_call_operand.vmem [shape: f32[16,11], index: 7, kind: output, shape index: {}]  }
   0x1   :  { %368 = vmatprep.subr.bf16.mxu0 %v433_v0  ;;  %v416_v1 = vld [vmem:[%s567_s1] sm:$0xff]   ;;  %370 = vmatprep.mubr.msk.bf16.mxu0 %vm434_vm0, %v433_v0  ;;  %v28_v3 = vld [vmem:[%s568_s0 + $0x8] sm:$0xff]  ;;  %v419_v7 = vld [vmem:[%s569_s3 + $0x10] sm:$0xff]  }
   0x2   :  { %v27_v2 = vld [vmem:[%s568_s0] sm:$0xff]  ;;  %374 = vmatprep.subr.bf16.mxu1 %v433_v0  ;;  %390 = vmatprep.mubr.msk.bf16.mxu1 %vm434_vm0, %v433_v0  ;;  %v418_v6 = vld [vmem:[%s569_s3 + $0x8] sm:$0xff]   ;;  %v420_v8 = vld [vmem:[%s569_s3 + $0x18] sm:$0xff]  }
   0x3   :  { %369 = vmatpush3.bf16.msra.mxu0 %v416_v1  ;;  %v29_v4 = vpack.c.bf16 %v28_v3, %v27_v2  ;;  %v417_v5 = vld [vmem:[%s569_s3] sm:$0xff]   ;;  %v422_v10 = vld [vmem:[%s569_s3 + $0x28] sm:$0xff]   ;;  %v423_v11 = vld [vmem:[%s569_s3 + $0x30] sm:$0xff]  }
   0x4   :  { %394 = vmatprep.subr.bf16.mxu0 %v433_v0  ;;  %375 = vmatpush3.bf16.msra.mxu1 %v417_v5  ;;  %v421_v9 = vld [vmem:[%s569_s3 + $0x20] sm:$0xff]   ;;  %v424_v12 = vld [vmem:[%s569_s3 + $0x38] sm:$0xff]   ;;  %v426_v14 = vld [vmem:[%s570_s5 + $0x8] sm:$0xff]  }
   0x5   :  { %376 = vmatprep.subr.bf16.mxu1 %v433_v0  ;;  %v425_v13 = vld [vmem:[%s570_s5] sm:$0xff]   ;;  %v427_v15 = vld [vmem:[%s570_s5 + $0x10] sm:$0xff]   ;;  %v428_v16 = vld [vmem:[%s570_s5 + $0x18] sm:$0xff]  }
   0x6   :  { %371 = vmatmul.mubr.msk.bf16.vlgmr.msra.gmra.mrb[0].mxu0 %vm45_vm1, %v29_v4  ;;  %v429_v17 = vld [vmem:[%s570_s5 + $0x20] sm:$0xff]   ;;  %v430_v18 = vld [vmem:[%s570_s5 + $0x28] sm:$0xff]   ;;  %v431_v29 = vld [vmem:[%s570_s5 + $0x30] sm:$0xff]  }
   0x7   :  { %410 = vmatprep.mubr.msk.bf16.mxu0 %vm434_vm0, %v433_v0  ;;  %395 = vmatpush3.bf16.msra.mxu0 %v425_v13  ;;  %v327_v19 = vld [vmem:[%s571_s2] ss:$0 sm:$0xff]  ;;  %v432_v30 = vld [vmem:[%s570_s5 + $0x38] sm:$0xff]  }
   0x8   :  { %377 = vmatpush3.bf16.msra.mxu1 %v418_v6  ;;  %396 = vmatprep.subr.bf16.mxu0 %v433_v0  ;;  %v330_v31 = vld [vmem:[%s572_s4] ss:$0 sm:$0xff] }
   0x9   :  { %378 = vmatprep.subr.bf16.mxu1 %v433_v0  ;;  %v339_v41 = vld [vmem:[%s573_s6] ss:$0 sm:$0xff] }
   0xb   :  { %397 = vmatpush3.bf16.msra.mxu0 %v426_v14 }
   0xc   :  { %379 = vmatpush3.bf16.msra.mxu1 %v419_v7  ;;  %398 = vmatprep.subr.bf16.mxu0 %v433_v0 }
   0xd   :  { %380 = vmatprep.subr.bf16.mxu1 %v433_v0 }
   0xf   :  { %399 = vmatpush3.bf16.msra.mxu0 %v427_v15 }
  0x10   :  { %381 = vmatpush3.bf16.msra.mxu1 %v420_v8  ;;  %400 = vmatprep.subr.bf16.mxu0 %v433_v0 }
  0x11   :  { %382 = vmatprep.subr.bf16.mxu1 %v433_v0 }
  0x13   :  { %401 = vmatpush3.bf16.msra.mxu0 %v428_v16 }
  0x14   :  { %383 = vmatpush3.bf16.msra.mxu1 %v421_v9  ;;  %402 = vmatprep.subr.bf16.mxu0 %v433_v0 }
  0x15   :  { %384 = vmatprep.subr.bf16.mxu1 %v433_v0 }
  0x17   :  { %403 = vmatpush3.bf16.msra.mxu0 %v429_v17 }
  0x18   :  { %385 = vmatpush3.bf16.msra.mxu1 %v422_v10  ;;  %404 = vmatprep.subr.bf16.mxu0 %v433_v0 }
  0x19   :  { %386 = vmatprep.subr.bf16.mxu1 %v433_v0 }
  0x1b   :  { %405 = vmatpush3.bf16.msra.mxu0 %v430_v18 }
  0x1c   :  { %387 = vmatpush3.bf16.msra.mxu1 %v423_v11  ;;  %406 = vmatprep.subr.bf16.mxu0 %v433_v0 }
  0x1d   :  { %388 = vmatprep.subr.bf16.mxu1 %v433_v0 }
  0x1f   :  { %407 = vmatpush3.bf16.msra.mxu0 %v431_v29 }
  0x20   :  { %389 = vmatpush3.bf16.msra.mxu1 %v424_v12  ;;  %408 = vmatprep.subr.bf16.mxu0 %v433_v0 }
  0x23   :  { %409 = vmatpush3.bf16.msra.mxu0 %v432_v30 }
  0xd9   :  { %v83_v20 = vpop.f32.mrb[0].mxu0 }
  0xda   :  { %v84_v21 = vadd.f32 %v327_v19, %v83_v20  ;;  %v372_v22 = vpop.f32.mrb[1].mxu0 }
  0xdb   :  { %v86_v23 = vpop.f32.mrb[2].mxu0 }
  0xdc   :  { %v87_v24 = vadd.f32 %v327_v19, %v86_v23  ;;  %v373_v25 = vpop.f32.mrb[3].mxu0  ;;  %v90_v26 = vmax.f32 %v84_v21, 0.0 }
  0xde   :  { %v91_v27 = vmax.f32 %v87_v24, 0.0 }
  0xe0   :  { %v92_v28 = vpack.c.bf16 %v91_v27, %v90_v26 }
  0xe2   :  { %391 = vmatmul.mubr.bf16.vlgmr.msra.gmra.mrb[0].mxu1 %v92_v28 }
 0x1b5   :  { %v198_v32 = vpop.f32.mrb[0].mxu1 }
 0x1b6   :  { %v199_v33 = vadd.f32 %v330_v31, %v198_v32  ;;  %v392_v34 = vpop.f32.mrb[1].mxu1 }
 0x1b7   :  { %v201_v35 = vpop.f32.mrb[2].mxu1 }
 0x1b8   :  { %v202_v36 = vadd.f32 %v330_v31, %v201_v35  ;;  %v393_v37 = vpop.f32.mrb[3].mxu1  ;;  %v205_v38 = vmax.f32 %v199_v33, 0.0 }
 0x1ba   :  { %v206_v39 = vmax.f32 %v202_v36, 0.0 }
 0x1bc   :  { %v207_v40 = vpack.c.bf16 %v206_v39, %v205_v38 }
 0x1be   :  { %411 = vmatmul.mubr.bf16.vlgmr.msra.gmra.mrb[4].mxu0 %v207_v40 }
 0x291   :  { %v313_v42 = vpop.f32.mrb[4].mxu0 }
 0x292   :  { %v314_v43 = vadd.f32 %v339_v41, %v313_v42  ;;  %v412_v44 = vpop.f32.mrb[5].mxu0 }
 0x293   :  { %v316_v45 = vpop.f32.mrb[6].mxu0 }
 0x294   :  { %321 = vst.msk [vmem:[%s574_s7] sm:$0xff] %vm320_vm2, %v314_v43  ;;  %v317_v46 = vadd.f32 %v339_v41, %v316_v45  ;;  %v413_v47 = vpop.f32.mrb[7].mxu0 }
 0x296   :  { %322 = vst.msk [vmem:[%s574_s7 + $0x8] sm:$0xff] %vm320_vm2, %v317_v46 }

</bundles_post_ra>
